<compile_context>
chip_gen: v6e
topology: v6e:2x2x1
jax: 0.10.0
libtpu: 0.0.40
codegen_flags: <defaults>
</compile_context>

<pallas_src>
import functools

import jax
import jax.numpy as jnp
from jax.experimental import pallas as pl
from jax.experimental.pallas import tpu as pltpu


# ----------------------------------------------------------------------------
# tiling helpers
# ----------------------------------------------------------------------------
_VMEM_LIMIT = 48 * 1024 * 1024  # explicit ceiling; safe on v5e/v6e (128 MiB) and v7x (64 MiB)


def _cparams(n_axes):
    return pltpu.CompilerParams(
        dimension_semantics=("parallel",) * n_axes,
        vmem_limit_bytes=_VMEM_LIMIT,
    )


def _row_tile(n, max_rows=512):
    """Largest row tile <= max_rows that evenly divides n.

    Big tiles amortize the ~0.35us/grid-step overhead of these mem-bound
    kernels; every candidate is a multiple of 8 (sublane-aligned) or the full
    array (which is always a legal block)."""
    if n <= max_rows:
        return n
    for t in range(max_rows, 7, -8):
        if n % t == 0:
            return t
    return n  # fall back to the whole array (single grid step)


def _win_batch(nw, seq_len, max_rows=1024):
    """Batch as many attention windows per grid step as fit ~max_rows tokens."""
    for wb in range(min(nw, max(1, max_rows // seq_len)), 0, -1):
        if nw % wb == 0:
            return wb
    return 1


def _ln(y, g, beta):
    """LayerNorm over the last dim (eps=1e-5, same as nn.LayerNorm), f32 math."""
    mu = jnp.mean(y, axis=-1, keepdims=True)
    var = jnp.mean((y - mu) ** 2, axis=-1, keepdims=True)
    return (y - mu) * jax.lax.rsqrt(var + 1e-5) * g + beta


# ----------------------------------------------------------------------------
# Pallas kernels
# ----------------------------------------------------------------------------
def _linear_ln_kernel(x_ref, w_ref, b_ref, g_ref, beta_ref, o_ref):
    # fused: (x @ w + b) -> LayerNorm.  Weights arrive as bf16; accumulate f32.
    y = jnp.dot(x_ref[...].astype(jnp.bfloat16), w_ref[...],
                preferred_element_type=jnp.float32) + b_ref[...]
    o_ref[...] = _ln(y, g_ref[...], beta_ref[...])


def _ln_kernel(x_ref, g_ref, b_ref, o_ref):
    o_ref[...] = _ln(x_ref[...], g_ref[...], b_ref[...])


def _mlp_block_kernel(x_ref, w1_ref, b1_ref, w2_ref, b2_ref, g_ref, beta_ref, o_ref):
    # fused MLP half of a Swin-V2 block: x + LN(fc2(GELU(fc1(x))))
    x = x_ref[...]
    h = jnp.dot(x.astype(jnp.bfloat16), w1_ref[...],
                preferred_element_type=jnp.float32) + b1_ref[...]
    h = jax.nn.gelu(h, approximate=False)  # erf-GELU, matches torch nn.GELU
    y = jnp.dot(h.astype(jnp.bfloat16), w2_ref[...],
                preferred_element_type=jnp.float32) + b2_ref[...]
    o_ref[...] = x + _ln(y, g_ref[...], beta_ref[...])


def _attn_block_kernel(x_ref, wqkv_ref, bqkv_ref, wproj_ref, bproj_ref,
                       scale_ref, bias_ref, g_ref, beta_ref, o_ref, *, heads):
    # fused attention half of a Swin-V2 block for a batch of windows:
    #   qkv linear -> scaled-cosine window attention -> proj linear
    #   -> LayerNorm -> residual add
    wb, seq, c = x_ref.shape
    hd = c // heads
    x = x_ref[...]                                  # (wb, L, c) f32
    x2 = x.reshape(wb * seq, c)

    qkv = jnp.dot(x2.astype(jnp.bfloat16), wqkv_ref[...],
                  preferred_element_type=jnp.float32) + bqkv_ref[...]
    qkv = qkv.reshape(wb, seq, 3 * c)

    head_outs = []
    for hi in range(heads):                         # static unroll (heads is small)
        qh = qkv[:, :, hi * hd:(hi + 1) * hd]
        kh = qkv[:, :, c + hi * hd:c + (hi + 1) * hd]
        vh = qkv[:, :, 2 * c + hi * hd:2 * c + (hi + 1) * hd]
        # Swin-V2 scaled-cosine attention: normalize(q)@normalize(k)^T * scale
        qn = qh * jax.lax.rsqrt(jnp.sum(qh * qh, axis=-1, keepdims=True) + 1e-12)
        kn = kh * jax.lax.rsqrt(jnp.sum(kh * kh, axis=-1, keepdims=True) + 1e-12)
        # fold the per-head logit scale into q before the matmul
        qn = qn * scale_ref[:, hi * hd:(hi + 1) * hd]
        attn = jnp.einsum("wqd,wkd->wqk", qn.astype(jnp.bfloat16),
                          kn.astype(jnp.bfloat16),
                          preferred_element_type=jnp.float32)
        attn = attn + bias_ref[hi]
        attn = attn - jnp.max(attn, axis=-1, keepdims=True)
        p = jnp.exp(attn)
        p = p * pl.reciprocal(jnp.sum(p, axis=-1, keepdims=True), approx=True)
        head_outs.append(jnp.einsum("wqk,wkd->wqd", p.astype(jnp.bfloat16),
                                    vh.astype(jnp.bfloat16),
                                    preferred_element_type=jnp.float32))
    ao = jnp.concatenate(head_outs, axis=-1).reshape(wb * seq, c)

    y = jnp.dot(ao.astype(jnp.bfloat16), wproj_ref[...],
                preferred_element_type=jnp.float32) + bproj_ref[...]
    o_ref[...] = (x2 + _ln(y, g_ref[...], beta_ref[...])).reshape(wb, seq, c)


# ----------------------------------------------------------------------------
# pallas_call wrappers
# ----------------------------------------------------------------------------
def linear_ln(x, w, b, g, beta):
    """LN(x @ w + b); x: (N, K), w: (K, M). Tiled over rows, weight resident."""
    n, k = x.shape
    m = w.shape[1]
    tn = _row_tile(n)
    return pl.pallas_call(
        _linear_ln_kernel,
        out_shape=jax.ShapeDtypeStruct((n, m), jnp.float32),
        grid=(n // tn,),
        in_specs=[
            pl.BlockSpec((tn, k), lambda i: (i, 0)),
            pl.BlockSpec((k, m), lambda i: (0, 0)),
            pl.BlockSpec((1, m), lambda i: (0, 0)),
            pl.BlockSpec((1, m), lambda i: (0, 0)),
            pl.BlockSpec((1, m), lambda i: (0, 0)),
        ],
        out_specs=pl.BlockSpec((tn, m), lambda i: (i, 0)),
        compiler_params=_cparams(1),
    )(x, w.astype(jnp.bfloat16), b.reshape(1, m), g.reshape(1, m),
      beta.reshape(1, m))


def layernorm(x, g, b):
    n, c = x.shape
    tn = _row_tile(n)
    return pl.pallas_call(
        _ln_kernel,
        out_shape=jax.ShapeDtypeStruct((n, c), jnp.float32),
        grid=(n // tn,),
        in_specs=[
            pl.BlockSpec((tn, c), lambda i: (i, 0)),
            pl.BlockSpec((1, c), lambda i: (0, 0)),
            pl.BlockSpec((1, c), lambda i: (0, 0)),
        ],
        out_specs=pl.BlockSpec((tn, c), lambda i: (i, 0)),
        compiler_params=_cparams(1),
    )(x, g.reshape(1, c), b.reshape(1, c))


def mlp_block(x2, p):
    """Fused MLP half of a block: x + LN(fc2(GELU(fc1(x)))). x2: (N, C)."""
    n, c = x2.shape
    hidden = p["w_fc1"].shape[1]
    tn = _row_tile(n)
    return pl.pallas_call(
        _mlp_block_kernel,
        out_shape=jax.ShapeDtypeStruct((n, c), jnp.float32),
        grid=(n // tn,),
        in_specs=[
            pl.BlockSpec((tn, c), lambda i: (i, 0)),
            pl.BlockSpec((c, hidden), lambda i: (0, 0)),
            pl.BlockSpec((1, hidden), lambda i: (0, 0)),
            pl.BlockSpec((hidden, c), lambda i: (0, 0)),
            pl.BlockSpec((1, c), lambda i: (0, 0)),
            pl.BlockSpec((1, c), lambda i: (0, 0)),
            pl.BlockSpec((1, c), lambda i: (0, 0)),
        ],
        out_specs=pl.BlockSpec((tn, c), lambda i: (i, 0)),
        compiler_params=_cparams(1),
    )(x2, p["w_fc1"].astype(jnp.bfloat16), p["b_fc1"].reshape(1, hidden),
      p["w_fc2"].astype(jnp.bfloat16), p["b_fc2"].reshape(1, c),
      p["g2"].reshape(1, c), p["bt2"].reshape(1, c))


def attn_block(xw, p):
    """Fused attention half of a block on windowed tokens xw: (nW, L, C)."""
    nw, seq, c = xw.shape
    heads = p["heads"]
    hd = c // heads
    wb = _win_batch(nw, seq)
    scale = jnp.exp(jnp.minimum(p["logit_scale"].reshape(heads), jnp.log(100.0)))
    scale_row = jnp.repeat(scale, hd).reshape(1, c)   # per-head scale, per channel
    kern = functools.partial(_attn_block_kernel, heads=heads)
    return pl.pallas_call(
        kern,
        out_shape=jax.ShapeDtypeStruct((nw, seq, c), jnp.float32),
        grid=(nw // wb,),
        in_specs=[
            pl.BlockSpec((wb, seq, c), lambda i: (i, 0, 0)),
            pl.BlockSpec((c, 3 * c), lambda i: (0, 0)),
            pl.BlockSpec((1, 3 * c), lambda i: (0, 0)),
            pl.BlockSpec((c, c), lambda i: (0, 0)),
            pl.BlockSpec((1, c), lambda i: (0, 0)),
            pl.BlockSpec((1, c), lambda i: (0, 0)),
            pl.BlockSpec((heads, seq, seq), lambda i: (0, 0, 0)),
            pl.BlockSpec((1, c), lambda i: (0, 0)),
            pl.BlockSpec((1, c), lambda i: (0, 0)),
        ],
        out_specs=pl.BlockSpec((wb, seq, c), lambda i: (i, 0, 0)),
        compiler_params=_cparams(1),
    )(xw, p["w_qkv"].astype(jnp.bfloat16), p["b_qkv"].reshape(1, 3 * c),
      p["w_proj"].astype(jnp.bfloat16), p["b_proj"].reshape(1, c),
      scale_row, p["rel_bias"], p["g1"].reshape(1, c), p["bt1"].reshape(1, c))


# ----------------------------------------------------------------------------
# JAX glue: window partition, Swin-V2 block, patch merging
# ----------------------------------------------------------------------------
def window_partition(x, ws):
    b, h, w, c = x.shape
    x = x.reshape(b, h // ws, ws, w // ws, ws, c)
    return x.transpose(0, 1, 3, 2, 4, 5).reshape(b * (h // ws) * (w // ws), ws * ws, c)


def window_reverse(xw, ws, b, h, w):
    c = xw.shape[-1]
    x = xw.reshape(b, h // ws, w // ws, ws, ws, c)
    return x.transpose(0, 1, 3, 2, 4, 5).reshape(b, h, w, c)


def swin_v2_block(x, p):
    """x: (B, H, W, C). Post-norm residual block (no shift: depth-0 block)."""
    b, h, w, c = x.shape
    ws = p["ws"]
    xw = window_partition(x, ws)                 # (nW, L, C)
    xw = attn_block(xw, p)                       # residual added inside the kernel
    x = window_reverse(xw, ws, b, h, w)
    x = mlp_block(x.reshape(-1, c), p).reshape(b, h, w, c)
    return x


def patch_merging(x, p):
    """torchvision PatchMergingV2: concat 2x2 -> Linear(4C,2C,no bias) -> LN."""
    b, h, w, c = x.shape
    x0 = x[:, 0::2, 0::2, :]
    x1 = x[:, 1::2, 0::2, :]
    x2 = x[:, 0::2, 1::2, :]
    x3 = x[:, 1::2, 1::2, :]
    xc = jnp.concatenate([x0, x1, x2, x3], axis=-1).reshape(-1, 4 * c)
    y = linear_ln(xc, p["w"], jnp.zeros((2 * c,), jnp.float32), p["g"], p["b"])
    return y.reshape(b, h // 2, w // 2, 2 * c)


# ----------------------------------------------------------------------------
# Parameter construction (deterministic; continuous-position-bias MLP is glue,
# input-independent, so it stays outside the kernels)
# ----------------------------------------------------------------------------
def make_rel_bias(ws, heads, key):
    rel = jnp.arange(-(ws - 1), ws, dtype=jnp.float32)
    table = jnp.stack(jnp.meshgrid(rel, rel, indexing="ij"), axis=-1)
    table = table / (ws - 1) * 8.0
    table = jnp.sign(table) * jnp.log2(jnp.abs(table) + 1.0) / jnp.log2(8.0)
    table = table.reshape(-1, 2)                       # ((2ws-1)^2, 2)

    k1, k2 = jax.random.split(key)
    w1 = jax.random.normal(k1, (2, 512), jnp.float32) * 0.02
    w2 = jax.random.normal(k2, (512, heads), jnp.float32) * 0.02
    bias_table = jnp.maximum(table @ w1, 0.0) @ w2     # ((2ws-1)^2, heads)

    coords = jnp.stack(jnp.meshgrid(jnp.arange(ws), jnp.arange(ws), indexing="ij"))
    cf = coords.reshape(2, -1)
    rc = (cf[:, :, None] - cf[:, None, :]).transpose(1, 2, 0) + (ws - 1)
    idx = rc[..., 0] * (2 * ws - 1) + rc[..., 1]       # (L, L)
    seq = ws * ws
    bias = bias_table[idx.reshape(-1)].reshape(seq, seq, heads).transpose(2, 0, 1)
    return 16.0 * jax.nn.sigmoid(bias)                 # (heads, L, L)


def make_params(key, embed_dim=32, depths=(1, 1), heads=(2, 4), ws=4):
    ks = iter(jax.random.split(key, 128))
    nrm = lambda shape: jax.random.normal(next(ks), shape, jnp.float32) * 0.02
    p = {
        "embed_w": nrm((4 * 4 * 3, embed_dim)),
        "embed_b": jnp.zeros((embed_dim,), jnp.float32),
        "embed_g": jnp.ones((embed_dim,), jnp.float32),
        "embed_beta": jnp.zeros((embed_dim,), jnp.float32),
    }
    stages, dim = [], embed_dim
    for si, (depth, h) in enumerate(zip(depths, heads)):
        blocks = []
        for _ in range(depth):
            hidden = 4 * dim
            blocks.append({
                "heads": h, "ws": ws,
                "w_qkv": nrm((dim, 3 * dim)),
                "b_qkv": jnp.zeros((3 * dim,), jnp.float32),
                "logit_scale": jnp.full((h, 1, 1), jnp.log(10.0), jnp.float32),
                "rel_bias": make_rel_bias(ws, h, next(ks)),
                "w_proj": nrm((dim, dim)),
                "b_proj": jnp.zeros((dim,), jnp.float32),
                "g1": jnp.ones((dim,), jnp.float32), "bt1": jnp.zeros((dim,), jnp.float32),
                "w_fc1": nrm((dim, hidden)), "b_fc1": jnp.zeros((hidden,), jnp.float32),
                "w_fc2": nrm((hidden, dim)), "b_fc2": jnp.zeros((dim,), jnp.float32),
                "g2": jnp.ones((dim,), jnp.float32), "bt2": jnp.zeros((dim,), jnp.float32),
            })
        st = {"blocks": blocks, "merge": None}
        if si < len(depths) - 1:
            st["merge"] = {
                "w": nrm((4 * dim, 2 * dim)),
                "g": jnp.ones((2 * dim,), jnp.float32),
                "b": jnp.zeros((2 * dim,), jnp.float32),
            }
            dim *= 2
        stages.append(st)
    p["stages"] = stages
    p["final_g"] = jnp.ones((dim,), jnp.float32)
    p["final_b"] = jnp.zeros((dim,), jnp.float32)
    return p


# ----------------------------------------------------------------------------
# Forward pass (== EncoderCNN.forward semantics)
# ----------------------------------------------------------------------------
def encoder_cnn_forward(images, params):
    # images: (B, 3, H, W) NCHW  ->  NHWC
    x = images.transpose(0, 2, 3, 1)
    b, h, w, _ = x.shape
    ps = 4
    # patch-embed conv (4x4 stride 4) as an unfold + fused matmul+LN
    x = x.reshape(b, h // ps, ps, w // ps, ps, 3).transpose(0, 1, 3, 2, 4, 5)
    x = x.reshape(b * (h // ps) * (w // ps), ps * ps * 3)
    x = linear_ln(x, params["embed_w"], params["embed_b"],
                  params["embed_g"], params["embed_beta"])
    c = params["embed_w"].shape[1]
    x = x.reshape(b, h // ps, w // ps, c)

    for stage in params["stages"]:
        for blk in stage["blocks"]:
            x = swin_v2_block(x, blk)
        if stage["merge"] is not None:
            x = patch_merging(x, stage["merge"])

    b2, h2, w2, c2 = x.shape
    x = layernorm(x.reshape(-1, c2), params["final_g"], params["final_b"])
    x = x.reshape(b2, h2, w2, c2)
    # backbone Permute NHWC->NCHW then EncoderCNN permute(0,2,3,1) back: identity
    return x


if __name__ == "__main__":
    key = jax.random.PRNGKey(0)
    k_img, k_par = jax.random.split(key)
    images = jax.random.normal(k_img, (2, 3, 32, 32), jnp.float32)  # NCHW
    params = make_params(k_par)

    out = encoder_cnn_forward(images, params)
    out = jax.block_until_ready(out)
    assert out.shape == (2, 4, 4, 64), out.shape  # NHWC output
    assert out.dtype == jnp.float32
    print("KERNEL_OK")
</pallas_src>

<mosaic_0001>
module attributes {stable_mosaic.version = 11 : i64} {
  func.func @_linear_ln_kernel(%arg0: i32, %arg1: memref<128x48xf32, #tpu.memory_space<vmem>>, %arg2: memref<48x32xbf16, #tpu.memory_space<vmem>>, %arg3: memref<1x32xf32, #tpu.memory_space<vmem>>, %arg4: memref<1x32xf32, #tpu.memory_space<vmem>>, %arg5: memref<1x32xf32, #tpu.memory_space<vmem>>, %arg6: memref<128x32xf32, #tpu.memory_space<vmem>>) attributes {dimension_semantics = [#tpu.dimension_semantics<parallel>], iteration_bounds = array<i64: 1>, scalar_prefetch = 0 : i64, scratch_operands = 0 : i64, tpu.core_type = #tpu.core_type<tc>, window_params = [{transform_indices = @transform_0, window_bounds = array<i64: 128, 48>}, {pipeline_mode = #tpu.pipeline_mode<synchronous>, transform_indices = @transform_1, window_bounds = array<i64: 48, 32>}, {pipeline_mode = #tpu.pipeline_mode<synchronous>, transform_indices = @transform_2, window_bounds = array<i64: 1, 32>}, {pipeline_mode = #tpu.pipeline_mode<synchronous>, transform_indices = @transform_3, window_bounds = array<i64: 1, 32>}, {pipeline_mode = #tpu.pipeline_mode<synchronous>, transform_indices = @transform_4, window_bounds = array<i64: 1, 32>}, {transform_indices = @transform_5, window_bounds = array<i64: 128, 32>}]} {
    %c0 = arith.constant 0 : index
    %c0_0 = arith.constant 0 : index
    %0 = vector.load %arg1[%c0, %c0_0] : memref<128x48xf32, #tpu.memory_space<vmem>>, vector<128x48xf32>
    %1 = arith.truncf %0 : vector<128x48xf32> to vector<128x48xbf16>
    %c0_1 = arith.constant 0 : index
    %c0_2 = arith.constant 0 : index
    %2 = vector.load %arg2[%c0_1, %c0_2] : memref<48x32xbf16, #tpu.memory_space<vmem>>, vector<48x32xbf16>
    %cst = arith.constant dense<0.000000e+00> : vector<128x32xf32>
    %3 = tpu.matmul %1, %2, %cst {dimension_numbers = #tpu.dot_dimension_numbers<[1], [0], [0], [1], [0, 0, 1, 1], [], []>} : vector<128x48xbf16>, vector<48x32xbf16>, vector<128x32xf32> -> vector<128x32xf32>
    %c0_3 = arith.constant 0 : index
    %c0_4 = arith.constant 0 : index
    %4 = vector.load %arg3[%c0_3, %c0_4] : memref<1x32xf32, #tpu.memory_space<vmem>>, vector<1x32xf32>
    %5 = vector.broadcast %4 : vector<1x32xf32> to vector<128x32xf32>
    %6 = arith.addf %3, %5 : vector<128x32xf32>
    %c0_5 = arith.constant 0 : index
    %c0_6 = arith.constant 0 : index
    %7 = vector.load %arg4[%c0_5, %c0_6] : memref<1x32xf32, #tpu.memory_space<vmem>>, vector<1x32xf32>
    %c0_7 = arith.constant 0 : index
    %c0_8 = arith.constant 0 : index
    %8 = vector.load %arg5[%c0_7, %c0_8] : memref<1x32xf32, #tpu.memory_space<vmem>>, vector<1x32xf32>
    %cst_9 = arith.constant dense<0.000000e+00> : vector<128xf32>
    %9 = vector.multi_reduction <add>, %6, %cst_9 [1] : vector<128x32xf32> to vector<128xf32>
    %10 = vector.shape_cast %9 : vector<128xf32> to vector<128x1xf32>
    %cst_10 = arith.constant 3.200000e+01 : f32
    %11 = vector.broadcast %cst_10 : f32 to vector<128x1xf32>
    %12 = arith.divf %10, %11 : vector<128x1xf32>
    %13 = vector.broadcast %12 : vector<128x1xf32> to vector<128x32xf32>
    %14 = arith.subf %6, %13 : vector<128x32xf32>
    %15 = arith.mulf %14, %14 : vector<128x32xf32>
    %cst_11 = arith.constant dense<0.000000e+00> : vector<128xf32>
    %16 = vector.multi_reduction <add>, %15, %cst_11 [1] : vector<128x32xf32> to vector<128xf32>
    %17 = vector.shape_cast %16 : vector<128xf32> to vector<128x1xf32>
    %cst_12 = arith.constant 3.200000e+01 : f32
    %18 = vector.broadcast %cst_12 : f32 to vector<128x1xf32>
    %19 = arith.divf %17, %18 : vector<128x1xf32>
    %20 = vector.broadcast %12 : vector<128x1xf32> to vector<128x32xf32>
    %21 = arith.subf %6, %20 : vector<128x32xf32>
    %cst_13 = arith.constant 9.99999974E-6 : f32
    %22 = vector.broadcast %cst_13 : f32 to vector<128x1xf32>
    %23 = arith.addf %19, %22 : vector<128x1xf32>
    %24 = math.rsqrt %23 : vector<128x1xf32>
    %25 = vector.broadcast %24 : vector<128x1xf32> to vector<128x32xf32>
    %26 = arith.mulf %21, %25 : vector<128x32xf32>
    %27 = vector.broadcast %7 : vector<1x32xf32> to vector<128x32xf32>
    %28 = arith.mulf %26, %27 : vector<128x32xf32>
    %29 = vector.broadcast %8 : vector<1x32xf32> to vector<128x32xf32>
    %30 = arith.addf %28, %29 : vector<128x32xf32>
    %c0_14 = arith.constant 0 : index
    %c0_15 = arith.constant 0 : index
    %31 = vector.load %arg6[%c0_14, %c0_15] : memref<128x32xf32, #tpu.memory_space<vmem>>, vector<128x32xf32>
    tpu.vector_store %arg6[%c0_14, %c0_15], %30 {strides = array<i32>} : memref<128x32xf32, #tpu.memory_space<vmem>>, vector<128x32xf32>,
    return
  }
  func.func @transform_0(%arg0: i32) -> (i32, i32) {
    %c0_i32 = arith.constant 0 : i32
    %c0_i32_0 = arith.constant 0 : i32
    return %arg0, %c0_i32 : i32, i32
  }
  func.func @transform_1(%arg0: i32) -> (i32, i32) {
    %c0_i32 = arith.constant 0 : i32
    %c0_i32_0 = arith.constant 0 : i32
    %c0_i32_1 = arith.constant 0 : i32
    return %c0_i32, %c0_i32_0 : i32, i32
  }
  func.func @transform_2(%arg0: i32) -> (i32, i32) {
    %c0_i32 = arith.constant 0 : i32
    %c0_i32_0 = arith.constant 0 : i32
    %c0_i32_1 = arith.constant 0 : i32
    return %c0_i32, %c0_i32_0 : i32, i32
  }
  func.func @transform_3(%arg0: i32) -> (i32, i32) {
    %c0_i32 = arith.constant 0 : i32
    %c0_i32_0 = arith.constant 0 : i32
    %c0_i32_1 = arith.constant 0 : i32
    return %c0_i32, %c0_i32_0 : i32, i32
  }
  func.func @transform_4(%arg0: i32) -> (i32, i32) {
    %c0_i32 = arith.constant 0 : i32
    %c0_i32_0 = arith.constant 0 : i32
    %c0_i32_1 = arith.constant 0 : i32
    return %c0_i32, %c0_i32_0 : i32, i32
  }
  func.func @transform_5(%arg0: i32) -> (i32, i32) {
    %c0_i32 = arith.constant 0 : i32
    %c0_i32_0 = arith.constant 0 : i32
    return %arg0, %c0_i32 : i32, i32
  }
}

</mosaic_0001>

<bundles_post_ra>
// kernel: tpu_custom_call.1
= control target key start
LH: loop header
LB: loop body
LE: loop exit
PB: predicated region body
PF: predicated region fallthrough
CT: control target
= control target key end

     0   :  { %vm76_vm0 = vcmask 392192   ;;  %vm200_vm1 = vcmask 261120   ;;  %s938_s1 = inlined_call_operand.vmem [shape: bf16[48,32], index: 1, kind: input, shape index: {}]   ;;  %s939_s0 = inlined_call_operand.vmem [shape: f32[128,48], index: 0, kind: input, shape index: {}]   ;;  %s940_s2 = inlined_call_operand.vmem [shape: f32[1,32], index: 2, kind: input, shape index: {}]   ;;  %s941_s3 = inlined_call_operand.vmem [shape: f32[1,32], index: 3, kind: input, shape index: {}]   ;;  %s942_s4 = inlined_call_operand.vmem [shape: f32[1,32], index: 4, kind: input, shape index: {}]   ;;  %s943_s5 = inlined_call_operand.vmem [shape: f32[128,32], index: 5, kind: output, shape index: {}]  }
   0x1   :  { %v527_v0 = vld [vmem:[%s938_s1 + $0x10] sm:$0xff]   ;;  %v528_v1 = vld [vmem:[%s938_s1 + $0x8] sm:$0xff]   ;;  %v21_v2 = vld [vmem:[%s939_s0] sm:$0xff] }
   0x2   :  { %499 = vmatprep.subr.bf16.mxu0 %v527_v0  ;;  %521 = vmatprep.subr.bf16.mxu1 %v527_v0  ;;  %v22_v3 = vld [vmem:[%s939_s0 + $0x8] sm:$0xff]  ;;  %v29_v4 = vld [vmem:[%s939_s0 + $0x40] sm:$0xff]  ;;  %v23_v9 = vld [vmem:[%s939_s0 + $0x10] sm:$0xff] }
   0x3   :  { %500 = vmatpush3.bf16.msra.mxu0 %v527_v0  ;;  %524 = vmatpush3.bf16.msra.mxu1 %v527_v0  ;;  %v529_v5 = vld [vmem:[%s938_s1] sm:$0xff]   ;;  %v37_v6 = vpack.c.bf16 %v22_v3, %v21_v2  ;;  %v30_v7 = vld [vmem:[%s939_s0 + $0x48] sm:$0xff]  ;;  %v24_v10 = vld [vmem:[%s939_s0 + $0x18] sm:$0xff] }
   0x4   :  { %501 = vmatprep.subr.bf16.mxu0 %v528_v1  ;;  %522 = vmatprep.subr.bf16.mxu1 %v528_v1  ;;  %v41_v8 = vpack.c.bf16 %v30_v7, %v29_v4  ;;  %v31_v11 = vld [vmem:[%s939_s0 + $0x50] sm:$0xff]  ;;  %v32_v12 = vld [vmem:[%s939_s0 + $0x58] sm:$0xff]  ;;  %v25_v13 = vld [vmem:[%s939_s0 + $0x20] sm:$0xff]  ;;  %v38_v17 = vpack.c.bf16 %v24_v10, %v23_v9 }
   0x5   :  { %505 = vmatprep.mubr.msk.bf16.mxu0 %vm76_vm0, %v37_v6  ;;  %v26_v14 = vld [vmem:[%s939_s0 + $0x28] sm:$0xff]  ;;  %v33_v15 = vld [vmem:[%s939_s0 + $0x60] sm:$0xff]  ;;  %v42_v18 = vpack.c.bf16 %v32_v12, %v31_v11  ;;  %v27_v21 = vld [vmem:[%s939_s0 + $0x30] sm:$0xff] }
   0x6   :  { %v34_v16 = vld [vmem:[%s939_s0 + $0x68] sm:$0xff]  ;;  %513 = vmatprep.mubr.msk.bf16.mxu1 %vm76_vm0, %v41_v8  ;;  %v39_v19 = vpack.c.bf16 %v26_v14, %v25_v13  ;;  %v28_v22 = vld [vmem:[%s939_s0 + $0x38] sm:$0xff]  ;;  %v35_v23 = vld [vmem:[%s939_s0 + $0x70] sm:$0xff] }
   0x7   :  { %502 = vmatpush3.bf16.msra.mxu0 %v528_v1  ;;  %525 = vmatpush3.bf16.msra.mxu1 %v528_v1  ;;  %v43_v20 = vpack.c.bf16 %v34_v16, %v33_v15  ;;  %v36_v24 = vld [vmem:[%s939_s0 + $0x78] sm:$0xff]  ;;  %v40_v25 = vpack.c.bf16 %v28_v22, %v27_v21  ;;  %v474_v27 = vld [vmem:[%s940_s2] ss:$0 sm:$0xff] }
   0x8   :  { %503 = vmatprep.subr.bf16.mxu0 %v529_v5  ;;  %523 = vmatprep.subr.bf16.mxu1 %v529_v5  ;;  %v44_v26 = vpack.c.bf16 %v36_v24, %v35_v23 }
   0xb   :  { %504 = vmatpush3.bf16.msra.mxu0 %v529_v5  ;;  %526 = vmatpush3.bf16.msra.mxu1 %v529_v5 }
   0xe   :  { %506 = vmatmul.mubr.msk.bf16.vlgmr.msra.gmra.mxu0 %vm76_vm0, %v38_v17  ;;  %514 = vmatmul.mubr.msk.bf16.vlgmr.msra.gmra.mxu1 %vm76_vm0, %v42_v18 }
   0xf   :  { %509 = vmatprep.mubr.msk.bf16.mxu0 %vm76_vm0, %v39_v19  ;;  %517 = vmatprep.mubr.msk.bf16.mxu1 %vm76_vm0, %v43_v20 }
  0x16   :  { %510 = vmatmul.mubr.msk.bf16.gmra.mxu0 %vm76_vm0, %v40_v25  ;;  %518 = vmatmul.mubr.msk.bf16.gmra.mxu1 %vm76_vm0, %v44_v26 }
  0xce   :  { %v507_v28 = vpop.f32.mrf.mxu0  ;;  %v515_v29 = vpop.f32.mrf.mxu1 }
  0xcf   :  { %v660_v30 = vadd.f32 %v507_v28, %v474_v27  ;;  %v662_v31 = vadd.f32 %v515_v29, %v474_v27 }
  0xd0   :  { %v135_v32 = vpop.f32.mrf.mxu0  ;;  %v167_v33 = vpop.f32.mrf.mxu1 }
  0xd1   :  { %v664_v34 = vadd.f32 %v474_v27, %v135_v32  ;;  %v231_v35 = vsel %vm200_vm1, %v662_v31, 0.0  ;;  %v207_v36 = vsel %vm200_vm1, %v660_v30, 0.0  ;;  %v670_v42 = vadd.f32 %v474_v27, %v167_v33 }
  0xd2   :  { %232 = vadd.xlane.f32.xlu0 %v231_v35  ;;  %v516_v37 = vpop.f32.mrf.mxu1  ;;  %208 = vadd.xlane.f32.xlu1 %v207_v36  ;;  %v508_v38 = vpop.f32.mrf.mxu0 }
  0xd3   :  { %v147_v39 = vadd.f32 %v508_v38, %v474_v27  ;;  %v672_v43 = vadd.f32 %v516_v37, %v474_v27  ;;  %v201_v45 = vsel %vm200_vm1, %v664_v34, 0.0  ;;  %v225_v52 = vsel %vm200_vm1, %v670_v42, 0.0 }
  0xd4   :  { %v138_v40 = vpop.f32.mrf.mxu0  ;;  %v170_v41 = vpop.f32.mrf.mxu1 }
  0xd5   :  { %v210_v44 = vsel %vm200_vm1, %v147_v39, 0.0  ;;  %v677_v49 = vadd.f32 %v474_v27, %v138_v40  ;;  %v679_v50 = vadd.f32 %v474_v27, %v170_v41  ;;  %v234_v51 = vsel %vm200_vm1, %v672_v43, 0.0 }
  0xd6   :  { %211 = vadd.xlane.f32.xlu1 %v210_v44  ;;  %202 = vadd.xlane.f32.xlu0 %v201_v45  ;;  %v511_v46 = vpop.f32.mrf.mxu0  ;;  %v519_v47 = vpop.f32.mrf.mxu1 }
  0xd7   :  { %v685_v55 = vadd.f32 %v511_v46, %v474_v27  ;;  %v228_v57 = vsel %vm200_vm1, %v679_v50, 0.0  ;;  %v204_v58 = vsel %vm200_vm1, %v677_v49, 0.0  ;;  %v709_v6 = vadd.f32 %v519_v47, %v474_v27 }
  0xd8   :  { %v151_v48 = vpop.f32.mrf.mxu0  ;;  %v183_v54 = vpop.f32.mrf.mxu1 }
  0xd9   :  { %v219_v62 = vsel %vm200_vm1, %v685_v55, 0.0  ;;  %v697_v63 = vadd.f32 %v474_v27, %v151_v48  ;;  %v701_v2 = vadd.f32 %v474_v27, %v183_v54  ;;  %v243_v11 = vsel %vm200_vm1, %v709_v6, 0.0 }
  0xda   :  { %235 = vadd.xlane.f32.xlu1 %v234_v51  ;;  %226 = vadd.xlane.f32.xlu0 %v225_v52  ;;  %v512_v53 = vpop.f32.mrf.mxu0  ;;  %v520_v60 = vpop.f32.mrf.mxu1 }
  0xdb   :  { %v687_v56 = vadd.f32 %v512_v53, %v474_v27  ;;  %v213_v5 = vsel %vm200_vm1, %v697_v63, 0.0  ;;  %v711_v7 = vadd.f32 %v520_v60, %v474_v27  ;;  %v237_v9 = vsel %vm200_vm1, %v701_v2, 0.0 }
  0xdc   :  { %v154_v59 = vpop.f32.mrf.mxu0  ;;  %v186_v1 = vpop.f32.mrf.mxu1 }
  0xdd   :  { %v222_v61 = vsel %vm200_vm1, %v687_v56, 0.0  ;;  %v699_v0 = vadd.f32 %v474_v27, %v154_v59  ;;  %v703_v3 = vadd.f32 %v474_v27, %v186_v1  ;;  %v246_v10 = vsel %vm200_vm1, %v711_v7, 0.0 }
  0xde   :  { %229 = vadd.xlane.f32.xlu1 %v228_v57  ;;  %205 = vadd.xlane.f32.xlu0 %v204_v58 }
  0xdf   :  { %v216_v4 = vsel %vm200_vm1, %v699_v0, 0.0  ;;  %v240_v8 = vsel %vm200_vm1, %v703_v3, 0.0 }
  0xe2   :  { %223 = vadd.xlane.f32.xlu1 %v222_v61  ;;  %220 = vadd.xlane.f32.xlu0 %v219_v62 }
  0xe6   :  { %217 = vadd.xlane.f32.xlu1 %v216_v4  ;;  %214 = vadd.xlane.f32.xlu0 %v213_v5 }
  0xea   :  { %241 = vadd.xlane.f32.xlu1 %v240_v8  ;;  %238 = vadd.xlane.f32.xlu0 %v237_v9 }
  0xee   :  { %247 = vadd.xlane.f32.xlu1 %v246_v10  ;;  %244 = vadd.xlane.f32.xlu0 %v243_v11 }
 0x15b   :  { %v233_v12 = vpop.xlane.xlu0 %232  ;;  %v209_v13 = vpop.xlane.xlu1 %208 }
 0x15c   :  { %v260_v14 = vmul.f32 0.03125, %v233_v12  ;;  %v252_v15 = vmul.f32 0.03125, %v209_v13 }
 0x15e   :  { %v722_v16 = vsub.f32 %v662_v31, %v260_v14  ;;  %v725_v17 = vsub.f32 %v660_v30, %v252_v15 }
 0x15f   :  { %v212_v18 = vpop.xlane.xlu1 %211  ;;  %v203_v19 = vpop.xlane.xlu0 %202 }
 0x160   :  { %v253_v20 = vmul.f32 0.03125, %v212_v18  ;;  %v250_v21 = vmul.f32 0.03125, %v203_v19  ;;  %v284_v22 = vmul.f32 %v725_v17, %v725_v17  ;;  %v292_v26 = vmul.f32 %v722_v16, %v722_v16 }
 0x162   :  { %v729_v23 = vsub.f32 %v147_v39, %v253_v20  ;;  %v732_v24 = vsub.f32 %v664_v34, %v250_v21  ;;  %v304_v25 = vsel %vm200_vm1, %v284_v22, 0.0  ;;  %v328_v36 = vsel %vm200_vm1, %v292_v26, 0.0 }
 0x163   :  { %v236_v27 = vpop.xlane.xlu1 %235  ;;  %305 = vadd.xlane.f32.xlu0 %v304_v25  ;;  %v227_v28 = vpop.xlane.xlu0 %226 }
 0x164   :  { %v261_v29 = vmul.f32 0.03125, %v236_v27  ;;  %v258_v30 = vmul.f32 0.03125, %v227_v28  ;;  %v285_v31 = vmul.f32 %v729_v23, %v729_v23  ;;  %v282_v32 = vmul.f32 %v732_v24, %v732_v24 }
 0x166   :  { %v742_v33 = vsub.f32 %v672_v43, %v261_v29  ;;  %v745_v34 = vsub.f32 %v670_v42, %v258_v30  ;;  %v307_v35 = vsel %vm200_vm1, %v285_v31, 0.0  ;;  %v298_v44 = vsel %vm200_vm1, %v282_v32, 0.0 }
 0x167   :  { %v230_v37 = vpop.xlane.xlu1 %229  ;;  %308 = vadd.xlane.f32.xlu1 %v307_v35  ;;  %329 = vadd.xlane.f32.xlu0 %v328_v36  ;;  %v206_v38 = vpop.xlane.xlu0 %205 }
 0x168   :  { %v259_v39 = vmul.f32 0.03125, %v230_v37  ;;  %v251_v40 = vmul.f32 0.03125, %v206_v38  ;;  %v293_v41 = vmul.f32 %v742_v33, %v742_v33  ;;  %v290_v46 = vmul.f32 %v745_v34, %v745_v34 }
 0x16a   :  { %v753_v43 = vsub.f32 %v679_v50, %v259_v39  ;;  %v756_v42 = vsub.f32 %v677_v49, %v251_v40  ;;  %v331_v45 = vsel %vm200_vm1, %v293_v41, 0.0  ;;  %v322_v57 = vsel %vm200_vm1, %v290_v46, 0.0 }
 0x16b   :  { %v224_v47 = vpop.xlane.xlu1 %223  ;;  %332 = vadd.xlane.f32.xlu1 %v331_v45  ;;  %299 = vadd.xlane.f32.xlu0 %v298_v44  ;;  %v221_v48 = vpop.xlane.xlu0 %220 }
 0x16c   :  { %v257_v51 = vmul.f32 0.03125, %v224_v47  ;;  %v256_v52 = vmul.f32 0.03125, %v221_v48  ;;  %v283_v53 = vmul.f32 %v756_v42, %v756_v42  ;;  %v291_v50 = vmul.f32 %v753_v43, %v753_v43 }
 0x16e   :  { %v766_v49 = vsub.f32 %v687_v56, %v257_v51  ;;  %v769_v54 = vsub.f32 %v685_v55, %v256_v52  ;;  %v301_v58 = vsel %vm200_vm1, %v283_v53, 0.0  ;;  %v325_v4 = vsel %vm200_vm1, %v291_v50, 0.0 }
 0x16f   :  { %v218_v59 = vpop.xlane.xlu1 %217  ;;  %323 = vadd.xlane.f32.xlu0 %v322_v57  ;;  %302 = vadd.xlane.f32.xlu1 %v301_v58  ;;  %v215_v60 = vpop.xlane.xlu0 %214 }
 0x170   :  { %v255_v61 = vmul.f32 0.03125, %v218_v59  ;;  %v254_v62 = vmul.f32 0.03125, %v215_v60  ;;  %v288_v1 = vmul.f32 %v769_v54, %v769_v54  ;;  %v289_v8 = vmul.f32 %v766_v49, %v766_v49 }
 0x172   :  { %v777_v56 = vsub.f32 %v699_v0, %v255_v61  ;;  %v780_v55 = vsub.f32 %v697_v63, %v254_v62  ;;  %v316_v5 = vsel %vm200_vm1, %v288_v1, 0.0  ;;  %v319_v15 = vsel %vm200_vm1, %v289_v8, 0.0  ;;  %v819_v8 = vld [vmem:[%s941_s3] ss:$0 sm:$0xff] }
 0x173   :  { %v242_v9 = vpop.xlane.xlu1 %241  ;;  %326 = vadd.xlane.f32.xlu1 %v325_v4  ;;  %317 = vadd.xlane.f32.xlu0 %v316_v5  ;;  %v239_v10 = vpop.xlane.xlu0 %238 }
 0x174   :  { %v263_v11 = vmul.f32 0.03125, %v242_v9  ;;  %v262_v12 = vmul.f32 0.03125, %v239_v10  ;;  %v286_v13 = vmul.f32 %v780_v55, %v780_v55  ;;  %v287_v0 = vmul.f32 %v777_v56, %v777_v56 }
 0x176   :  { %v790_v63 = vsub.f32 %v703_v3, %v263_v11  ;;  %v793_v14 = vsub.f32 %v701_v2, %v262_v12  ;;  %v310_v18 = vsel %vm200_vm1, %v286_v13, 0.0  ;;  %v313_v26 = vsel %vm200_vm1, %v287_v0, 0.0  ;;  %v825_v12 = vld [vmem:[%s942_s4] ss:$0 sm:$0xff] }
 0x177   :  { %v248_v19 = vpop.xlane.xlu1 %247  ;;  %320 = vadd.xlane.f32.xlu1 %v319_v15  ;;  %311 = vadd.xlane.f32.xlu0 %v310_v18  ;;  %v245_v20 = vpop.xlane.xlu0 %244 }
 0x178   :  { %v265_v21 = vmul.f32 0.03125, %v248_v19  ;;  %v264_v22 = vmul.f32 0.03125, %v245_v20  ;;  %v294_v25 = vmul.f32 %v793_v14, %v793_v14  ;;  %v295_v28 = vmul.f32 %v790_v63, %v790_v63 }
 0x17a   :  { %v801_v3 = vsub.f32 %v711_v7, %v265_v21  ;;  %v804_v2 = vsub.f32 %v709_v6, %v264_v22  ;;  %v334_v27 = vsel %vm200_vm1, %v294_v25, 0.0  ;;  %v337_v30 = vsel %vm200_vm1, %v295_v28, 0.0 }
 0x17b   :  { %314 = vadd.xlane.f32.xlu1 %v313_v26  ;;  %335 = vadd.xlane.f32.xlu0 %v334_v27 }
 0x17c   :  { %v296_v29 = vmul.f32 %v804_v2, %v804_v2  ;;  %v297_v7 = vmul.f32 %v801_v3, %v801_v3 }
 0x17e   :  { %v340_v31 = vsel %vm200_vm1, %v296_v29, 0.0  ;;  %v343_v6 = vsel %vm200_vm1, %v297_v7, 0.0 }
 0x17f   :  { %338 = vadd.xlane.f32.xlu1 %v337_v30  ;;  %341 = vadd.xlane.f32.xlu0 %v340_v31 }
 0x183   :  { %344 = vadd.xlane.f32.xlu1 %v343_v6 }
 0x1ec   :  { %v306_v32 = vpop.xlane.xlu0 %305 }
 0x1ed   :  { %v348_v35 = vmul.f32 0.03125, %v306_v32 }
 0x1ef   :  { %v364_v36 = vadd.f32 1e-05, %v348_v35 }
 0x1f0   :  { %v309_v37 = vpop.xlane.xlu1 %308  ;;  %v330_v38 = vpop.xlane.xlu0 %329 }
 0x1f1   :  { %530 = vrsqrt.f32 %v364_v36  ;;  %v349_v39 = vmul.f32 0.03125, %v309_v37  ;;  %v356_v40 = vmul.f32 0.03125, %v330_v38 }
 0x1f3   :  { %v365_v41 = vadd.f32 1e-05, %v349_v39  ;;  %v372_v44 = vadd.f32 1e-05, %v356_v40 }
 0x1f4   :  { %v333_v45 = vpop.xlane.xlu1 %332  ;;  %v300_v46 = vpop.xlane.xlu0 %299 }
 0x1f5   :  { %532 = vrsqrt.f32 %v365_v41  ;;  %v357_v47 = vmul.f32 0.03125, %v333_v45  ;;  %v346_v48 = vmul.f32 0.03125, %v300_v46 }
 0x1f6   :  { %534 = vrsqrt.f32 %v372_v44 }
 0x1f7   :  { %v373_v51 = vadd.f32 1e-05, %v357_v47  ;;  %v362_v52 = vadd.f32 1e-05, %v346_v48 }
 0x1f8   :  { %v303_v53 = vpop.xlane.xlu1 %302  ;;  %v324_v50 = vpop.xlane.xlu0 %323 }
 0x1f9   :  { %536 = vrsqrt.f32 %v373_v51  ;;  %v347_v57 = vmul.f32 0.03125, %v303_v53  ;;  %v354_v58 = vmul.f32 0.03125, %v324_v50 }
 0x1fa   :  { %538 = vrsqrt.f32 %v362_v52 }
 0x1fb   :  { %v363_v59 = vadd.f32 1e-05, %v347_v57  ;;  %v370_v60 = vadd.f32 1e-05, %v354_v58 }
 0x1fc   :  { %v327_v61 = vpop.xlane.xlu1 %326  ;;  %v318_v62 = vpop.xlane.xlu0 %317 }
 0x1fd   :  { %540 = vrsqrt.f32 %v363_v59  ;;  %v355_v1 = vmul.f32 0.03125, %v327_v61  ;;  %v352_v4 = vmul.f32 0.03125, %v318_v62 }
 0x1fe   :  { %v531_v5 = vpop.eup %530  ;;  %542 = vrsqrt.f32 %v370_v60 }
 0x1ff   :  { %v396_v9 = vmul.f32 %v531_v5, %v725_v17  ;;  %v371_v10 = vadd.f32 1e-05, %v355_v1  ;;  %v368_v11 = vadd.f32 1e-05, %v352_v4 }
 0x200   :  { %v321_v13 = vpop.xlane.xlu1 %320  ;;  %v312_v0 = vpop.xlane.xlu0 %311 }
 0x201   :  { %v418_v15 = vmul.f32 %v819_v8, %v396_v9  ;;  %544 = vrsqrt.f32 %v371_v10  ;;  %v353_v18 = vmul.f32 0.03125, %v321_v13  ;;  %v350_v19 = vmul.f32 0.03125, %v312_v0 }
 0x202   :  { %v533_v20 = vpop.eup %532  ;;  %546 = vrsqrt.f32 %v368_v11 }
 0x203   :  { %v535_v21 = vpop.eup %534  ;;  %v440_v22 = vadd.f32 %v825_v12, %v418_v15  ;;  %v397_v17 = vmul.f32 %v533_v20, %v729_v23  ;;  %v369_v25 = vadd.f32 1e-05, %v353_v18  ;;  %v366_v26 = vadd.f32 1e-05, %v350_v19 }
 0x204   :  { %v404_v27 = vmul.f32 %v535_v21, %v722_v16  ;;  %v315_v28 = vpop.xlane.xlu1 %314  ;;  %v336_v29 = vpop.xlane.xlu0 %335 }
 0x205   :  { %456 = vst.msk [vmem:[%s943_s5 + $0x10] sm:$0xff] %vm200_vm1, %v440_v22  ;;  %v419_v30 = vmul.f32 %v819_v8, %v397_v17  ;;  %548 = vrsqrt.f32 %v369_v25  ;;  %v351_v31 = vmul.f32 0.03125, %v315_v28  ;;  %v358_v7 = vmul.f32 0.03125, %v336_v29 }
 0x206   :  { %v537_v6 = vpop.eup %536  ;;  %v426_v32 = vmul.f32 %v819_v8, %v404_v27  ;;  %550 = vrsqrt.f32 %v366_v26 }
 0x207   :  { %v539_v23 = vpop.eup %538  ;;  %v441_v35 = vadd.f32 %v825_v12, %v419_v30  ;;  %v405_v16 = vmul.f32 %v537_v6, %v742_v33  ;;  %v367_v36 = vadd.f32 1e-05, %v351_v31  ;;  %v374_v37 = vadd.f32 1e-05, %v358_v7 }
 0x208   :  { %v448_v38 = vadd.f32 %v825_v12, %v426_v32  ;;  %v394_v39 = vmul.f32 %v539_v23, %v732_v24  ;;  %v339_v40 = vpop.xlane.xlu1 %338  ;;  %v342_v41 = vpop.xlane.xlu0 %341 }
 0x209   :  { %457 = vst.msk [vmem:[%s943_s5 + $0x18] sm:$0xff] %vm200_vm1, %v441_v35  ;;  %v427_v44 = vmul.f32 %v819_v8, %v405_v16  ;;  %552 = vrsqrt.f32 %v367_v36  ;;  %v359_v45 = vmul.f32 0.03125, %v339_v40  ;;  %v360_v46 = vmul.f32 0.03125, %v342_v41 }
 0x20a   :  { %v541_v47 = vpop.eup %540  ;;  %464 = vst.msk [vmem:[%s943_s5 + $0x50] sm:$0xff] %vm200_vm1, %v448_v38  ;;  %v416_v24 = vmul.f32 %v819_v8, %v394_v39  ;;  %554 = vrsqrt.f32 %v374_v37 }
 0x20b   :  { %v543_v33 = vpop.eup %542  ;;  %v449_v48 = vadd.f32 %v825_v12, %v427_v44  ;;  %v395_v51 = vmul.f32 %v541_v47, %v756_v42  ;;  %v375_v52 = vadd.f32 1e-05, %v359_v45  ;;  %v376_v53 = vadd.f32 1e-05, %v360_v46 }
 0x20c   :  { %v438_v50 = vadd.f32 %v825_v12, %v416_v24  ;;  %v402_v57 = vmul.f32 %v543_v33, %v745_v34  ;;  %v345_v58 = vpop.xlane.xlu1 %344 }
 0x20d   :  { %465 = vst.msk [vmem:[%s943_s5 + $0x58] sm:$0xff] %vm200_vm1, %v449_v48  ;;  %v417_v59 = vmul.f32 %v819_v8, %v395_v51  ;;  %556 = vrsqrt.f32 %v375_v52  ;;  %v361_v60 = vmul.f32 0.03125, %v345_v58 }
 0x20e   :  { %v545_v61 = vpop.eup %544  ;;  %454 = vst.msk [vmem:[%s943_s5] sm:$0xff] %vm200_vm1, %v438_v50  ;;  %v424_v42 = vmul.f32 %v819_v8, %v402_v57  ;;  %558 = vrsqrt.f32 %v376_v53 }
 0x20f   :  { %v547_v34 = vpop.eup %546  ;;  %v439_v62 = vadd.f32 %v825_v12, %v417_v59  ;;  %v403_v1 = vmul.f32 %v545_v61, %v753_v43  ;;  %v377_v4 = vadd.f32 1e-05, %v361_v60 }
 0x210   :  { %v446_v5 = vadd.f32 %v825_v12, %v424_v42  ;;  %v400_v9 = vmul.f32 %v547_v34, %v769_v54 }
 0x211   :  { %455 = vst.msk [vmem:[%s943_s5 + $0x8] sm:$0xff] %vm200_vm1, %v439_v62  ;;  %v425_v10 = vmul.f32 %v819_v8, %v403_v1  ;;  %560 = vrsqrt.f32 %v377_v4 }
 0x212   :  { %v549_v11 = vpop.eup %548  ;;  %462 = vst.msk [vmem:[%s943_s5 + $0x40] sm:$0xff] %vm200_vm1, %v446_v5  ;;  %v422_v43 = vmul.f32 %v819_v8, %v400_v9 }
 0x213   :  { %v551_v13 = vpop.eup %550  ;;  %v447_v0 = vadd.f32 %v825_v12, %v425_v10  ;;  %v401_v54 = vmul.f32 %v549_v11, %v766_v49 }
 0x214   :  { %v444_v15 = vadd.f32 %v825_v12, %v422_v43  ;;  %v398_v18 = vmul.f32 %v551_v13, %v780_v55 }
 0x215   :  { %463 = vst.msk [vmem:[%s943_s5 + $0x48] sm:$0xff] %vm200_vm1, %v447_v0  ;;  %v423_v19 = vmul.f32 %v819_v8, %v401_v54 }
 0x216   :  { %v553_v20 = vpop.eup %552  ;;  %460 = vst.msk [vmem:[%s943_s5 + $0x30] sm:$0xff] %vm200_vm1, %v444_v15  ;;  %v420_v21 = vmul.f32 %v819_v8, %v398_v18 }
 0x217   :  { %v555_v49 = vpop.eup %554  ;;  %v445_v22 = vadd.f32 %v825_v12, %v423_v19  ;;  %v399_v55 = vmul.f32 %v553_v20, %v777_v56 }
 0x218   :  { %v442_v17 = vadd.f32 %v825_v12, %v420_v21  ;;  %v406_v25 = vmul.f32 %v555_v49, %v793_v14 }
 0x219   :  { %461 = vst.msk [vmem:[%s943_s5 + $0x38] sm:$0xff] %vm200_vm1, %v445_v22  ;;  %v421_v26 = vmul.f32 %v819_v8, %v399_v55 }
 0x21a   :  { %v557_v27 = vpop.eup %556  ;;  %458 = vst.msk [vmem:[%s943_s5 + $0x20] sm:$0xff] %vm200_vm1, %v442_v17  ;;  %v428_v28 = vmul.f32 %v819_v8, %v406_v25 }
 0x21b   :  { %v559_v56 = vpop.eup %558  ;;  %v443_v29 = vadd.f32 %v825_v12, %v421_v26  ;;  %v407_v14 = vmul.f32 %v557_v27, %v790_v63 }
 0x21c   :  { %v450_v30 = vadd.f32 %v825_v12, %v428_v28  ;;  %v408_v31 = vmul.f32 %v559_v56, %v804_v2 }
 0x21d   :  { %459 = vst.msk [vmem:[%s943_s5 + $0x28] sm:$0xff] %vm200_vm1, %v443_v29  ;;  %v429_v7 = vmul.f32 %v819_v8, %v407_v14 }
 0x21e   :  { %v561_v6 = vpop.eup %560  ;;  %466 = vst.msk [vmem:[%s943_s5 + $0x60] sm:$0xff] %vm200_vm1, %v450_v30  ;;  %v430_v32 = vmul.f32 %v819_v8, %v408_v31 }
 0x21f   :  { %v451_v63 = vadd.f32 %v825_v12, %v429_v7  ;;  %v409_v23 = vmul.f32 %v561_v6, %v801_v3 }
 0x220   :  { %v452_v2 = vadd.f32 %v825_v12, %v430_v32 }
 0x221   :  { %467 = vst.msk [vmem:[%s943_s5 + $0x68] sm:$0xff] %vm200_vm1, %v451_v63  ;;  %v431_v35 = vmul.f32 %v819_v8, %v409_v23 }
 0x222   :  { %468 = vst.msk [vmem:[%s943_s5 + $0x70] sm:$0xff] %vm200_vm1, %v452_v2 }
 0x223   :  { %v453_v16 = vadd.f32 %v825_v12, %v431_v35 }
 0x225   :  { %469 = vst.msk [vmem:[%s943_s5 + $0x78] sm:$0xff] %vm200_vm1, %v453_v16 }

</bundles_post_ra>
